<compile_context>
chip_gen: v7x
topology: tpu7x:2x2x1
jax: 0.10.0
libtpu: 0.0.40
codegen_flags: <defaults>
</compile_context>

<pallas_src>
import functools
import math

import jax
import jax.numpy as jnp
from jax import lax
from jax.experimental import pallas as pl
from jax.experimental.pallas import tpu as pltpu

MiB = 1024 * 1024


def _round_up(x, m):
    return ((x + m - 1) // m) * m


def _vmem_cap_bytes():
    """Generation-aware scoped-VMEM ceiling: ~75% of physical per-TC VMEM."""
    cap = 64 * MiB  # conservative fallback = v7x physical per-TC VMEM
    try:
        info = pltpu.get_tpu_info()
        cap = int(getattr(info, "vmem_capacity_bytes", cap))
    except Exception:
        pass
    return max(32 * MiB, (3 * cap) // 4)  # ~96 MiB on v5e/v6e, ~48 MiB on v7x


def _vmem_limit(need_bytes):
    return int(min(_vmem_cap_bytes(), max(16 * MiB, int(need_bytes) + 4 * MiB)))


# ---------------------------------------------------------------------------
# Kernels
# ---------------------------------------------------------------------------
def _linear_kernel(x_ref, w_ref, b_ref, o_ref, acc_ref):
    """One (tm, tn) output tile; K is the innermost ('arbitrary') grid axis.

    Operands already arrive in the matmul dtype (bf16 ingest); accumulation is f32.
    """

    @pl.when(pl.program_id(2) == 0)
    def _init():
        acc_ref[...] = jnp.zeros_like(acc_ref)

    acc_ref[...] += jnp.dot(x_ref[...], w_ref[...],
                            preferred_element_type=jnp.float32)

    @pl.when(pl.program_id(2) == pl.num_programs(2) - 1)
    def _finalize():
        o_ref[...] = (acc_ref[...] + b_ref[...]).astype(o_ref.dtype)


def _flash_attn_kernel(q_ref, k_ref, v_ref, o_ref, m_sc, l_sc, acc_sc, *,
                       seq_len, tkv, needs_kv_mask, exact_recip):
    """Non-causal flash attention step for one (batch*head, q-block, kv-block) cell.

    q_ref: (tq, D)  (softmax scale already folded into q)
    k_ref/v_ref: (tkv, D)
    o_ref: (tq, D), written on the last kv step.
    """
    ki = pl.program_id(2)

    @pl.when(ki == 0)
    def _init():
        m_sc[...] = jnp.full_like(m_sc, -jnp.inf)
        l_sc[...] = jnp.zeros_like(l_sc)
        acc_sc[...] = jnp.zeros_like(acc_sc)

    # QK^T: contract the D axis of q and k directly (no explicit k transpose).
    # TODO(synk): emit k in (D, T) layout from the QKV linear's out_spec if Mosaic
    #             inserts a vxpose for this contraction.
    s = lax.dot_general(q_ref[...], k_ref[...], (((1,), (1,)), ((), ())),
                        preferred_element_type=jnp.float32)          # (tq, tkv) f32

    if needs_kv_mask:
        col = lax.broadcasted_iota(jnp.int32, s.shape, 1) + ki * tkv
        s = jnp.where(col < seq_len, s, -1e30)

    m_prev = m_sc[...]
    m_new = jnp.maximum(m_prev, jnp.max(s, axis=-1, keepdims=True))
    alpha = jnp.exp(m_prev - m_new)
    p = jnp.exp(s - m_new)                                           # f32 softmax math
    l_sc[...] = alpha * l_sc[...] + jnp.sum(p, axis=-1, keepdims=True)
    acc_sc[...] = alpha * acc_sc[...] + jnp.dot(
        p.astype(v_ref.dtype), v_ref[...], preferred_element_type=jnp.float32)
    m_sc[...] = m_new

    @pl.when(ki == pl.num_programs(2) - 1)
    def _finalize():
        inv_l = pl.reciprocal(l_sc[...], approx=not exact_recip)
        o_ref[...] = (acc_sc[...] * inv_l).astype(o_ref.dtype)


# ---------------------------------------------------------------------------
# Wrappers
# ---------------------------------------------------------------------------
def pallas_linear(x2d, w, b, *, matmul_dtype=jnp.bfloat16,
                  tm_target=512, tn_target=512, tk_target=1024):
    """(M, K) @ (K, N) + (N,) -> (M, N) f32, tiled over (M, N, K) with f32 accumulator.

    Inputs are zero-padded to tile multiples (padding contributes zeros to the matmul)
    and the padded rows/cols are sliced off the result.
    """
    M, K = x2d.shape
    K2, N = w.shape
    assert K == K2

    tm = min(tm_target, _round_up(M, 16))    # 16-row alignment for bf16 sublane packing
    tn = min(tn_target, _round_up(N, 128))
    tk = min(tk_target, _round_up(K, 128))
    Mp, Np, Kp = _round_up(M, tm), _round_up(N, tn), _round_up(K, tk)

    xb = x2d.astype(matmul_dtype)
    wb = w.astype(matmul_dtype)
    if (Mp, Kp) != (M, K):
        xb = jnp.pad(xb, ((0, Mp - M), (0, Kp - K)))
    if (Kp, Np) != (K, N):
        wb = jnp.pad(wb, ((0, Kp - K), (0, Np - N)))
    b2d = b.astype(jnp.float32).reshape(1, N)
    if Np != N:
        b2d = jnp.pad(b2d, ((0, 0), (0, Np - N)))

    isz = jnp.dtype(matmul_dtype).itemsize
    need = (2 * (tm * tk + tk * tn) * isz     # double-buffered matmul operands
            + 2 * tn * 4                      # double-buffered bias block
            + 2 * tm * tn * 4                 # double-buffered output block
            + tm * tn * 4)                    # f32 accumulator scratch

    out = pl.pallas_call(
        _linear_kernel,
        out_shape=jax.ShapeDtypeStruct((Mp, Np), jnp.float32),
        grid_spec=pltpu.PrefetchScalarGridSpec(
            num_scalar_prefetch=0,
            grid=(Mp // tm, Np // tn, Kp // tk),
            in_specs=[
                pl.BlockSpec((tm, tk), lambda i, j, k: (i, k)),
                pl.BlockSpec((tk, tn), lambda i, j, k: (k, j)),
                pl.BlockSpec((1, tn), lambda i, j, k: (0, j)),
            ],
            out_specs=pl.BlockSpec((tm, tn), lambda i, j, k: (i, j)),
            scratch_shapes=[pltpu.VMEM((tm, tn), jnp.float32)],
        ),
        compiler_params=pltpu.CompilerParams(
            dimension_semantics=("parallel", "parallel", "arbitrary"),
            vmem_limit_bytes=_vmem_limit(need),
        ),
    )(xb, wb, b2d)
    return out[:M, :N]


def pallas_flash_attention(q, k, v, *, exact_recip=False,
                           tq_target=256, tkv_target=512):
    """q, k, v: (B*H, T, D), head-major, scale already folded into q.  Returns (B*H, T, D) f32.

    KV-blocked online softmax; grid = (B*H, Tq blocks, Tkv blocks) with the kv axis
    innermost/'arbitrary' and m/l/acc carried in VMEM scratch.
    """
    BH, T, D = q.shape

    tq = min(tq_target, _round_up(T, 8))
    tkv = min(tkv_target, _round_up(T, 8))
    Tq = _round_up(T, tq)
    Tk = _round_up(T, tkv)

    if Tq != T:     # padded query rows produce garbage rows that are sliced off below
        q = jnp.pad(q, ((0, 0), (0, Tq - T), (0, 0)))
    if Tk != T:     # padded kv positions are masked to -inf inside the kernel
        k = jnp.pad(k, ((0, 0), (0, Tk - T), (0, 0)))
        v = jnp.pad(v, ((0, 0), (0, Tk - T), (0, 0)))

    kernel = functools.partial(
        _flash_attn_kernel, seq_len=T, tkv=tkv,
        needs_kv_mask=(Tk != T), exact_recip=exact_recip)

    isz = q.dtype.itemsize
    need = (2 * tq * D * isz          # double-buffered q block
            + 4 * tkv * D * isz       # double-buffered k + v blocks
            + 2 * tq * D * 4          # double-buffered output block
            + tq * (D + 2) * 4        # m / l / acc scratch
            + 3 * tq * tkv * 4)       # live f32 score / prob tiles

    out = pl.pallas_call(
        kernel,
        out_shape=jax.ShapeDtypeStruct((BH, Tq, D), jnp.float32),
        grid_spec=pltpu.PrefetchScalarGridSpec(
            num_scalar_prefetch=0,
            grid=(BH, Tq // tq, Tk // tkv),
            in_specs=[
                pl.BlockSpec((None, tq, D), lambda bh, qi, ki: (bh, qi, 0)),
                pl.BlockSpec((None, tkv, D), lambda bh, qi, ki: (bh, ki, 0)),
                pl.BlockSpec((None, tkv, D), lambda bh, qi, ki: (bh, ki, 0)),
            ],
            out_specs=pl.BlockSpec((None, tq, D), lambda bh, qi, ki: (bh, qi, 0)),
            scratch_shapes=[
                pltpu.VMEM((tq, 1), jnp.float32),   # running max
                pltpu.VMEM((tq, 1), jnp.float32),   # running denom
                pltpu.VMEM((tq, D), jnp.float32),   # running numerator
            ],
        ),
        compiler_params=pltpu.CompilerParams(
            dimension_semantics=("parallel", "parallel", "arbitrary"),
            vmem_limit_bytes=_vmem_limit(need),
        ),
    )(q, k, v)
    return out[:, :T, :] if Tq != T else out


def attention_head_forward(x, params, n_head, matmul_dtype=jnp.bfloat16):
    """Forward pass mirroring AttentionHead.forward. x: (B, T, C) float32."""
    B, T, C = x.shape
    H = n_head
    D = C // H
    scale = 1.0 / math.sqrt(D)  # F.scaled_dot_product_attention default scale

    # qkv = self.attn(x)
    qkv = pallas_linear(x.reshape(B * T, C), params["attn_w"], params["attn_b"],
                        matmul_dtype=matmul_dtype)                  # (B*T, 3C) f32

    # Head-major layout plumbing so the flash kernel sees lane-dense per-head blocks.
    # Scale is folded into q in f32 before any bf16 cast.
    qkv = qkv.reshape(B, T, 3, H, D)
    q = (qkv[:, :, 0] * scale).transpose(0, 2, 1, 3).reshape(B * H, T, D)
    k = qkv[:, :, 1].transpose(0, 2, 1, 3).reshape(B * H, T, D)
    v = qkv[:, :, 2].transpose(0, 2, 1, 3).reshape(B * H, T, D)
    # TODO(synk): emit head-major (and k as (D, T)) directly from the QKV linear's
    #             out_spec index_map to drop these wrapper-side XLA transposes.

    exact = jnp.dtype(matmul_dtype) == jnp.dtype(jnp.float32)
    y = pallas_flash_attention(q.astype(matmul_dtype), k.astype(matmul_dtype),
                               v.astype(matmul_dtype), exact_recip=exact)  # (B*H, T, D)

    y = y.reshape(B, H, T, D).transpose(0, 2, 1, 3).reshape(B * T, C)

    # y = self.proj(y)
    y = pallas_linear(y, params["proj_w"], params["proj_b"], matmul_dtype=matmul_dtype)
    return y.reshape(B, T, C)


# ---------------------------------------------------------------------------
# Reference (pure JAX) for correctness check
# ---------------------------------------------------------------------------
def reference_forward(x, params, n_head):
    B, T, C = x.shape
    D = C // n_head
    qkv = x @ params["attn_w"] + params["attn_b"]
    q, k, v = jnp.split(qkv, 3, axis=2)
    q = q.reshape(B, T, n_head, D).transpose(0, 2, 1, 3)
    k = k.reshape(B, T, n_head, D).transpose(0, 2, 1, 3)
    v = v.reshape(B, T, n_head, D).transpose(0, 2, 1, 3)
    s = jnp.einsum("bhtd,bhsd->bhts", q, k) / math.sqrt(D)
    p = jax.nn.softmax(s, axis=-1)
    y = jnp.einsum("bhts,bhsd->bhtd", p, v)
    y = y.transpose(0, 2, 1, 3).reshape(B, T, C)
    return y @ params["proj_w"] + params["proj_b"]


# ---------------------------------------------------------------------------
# Main
# ---------------------------------------------------------------------------
if __name__ == "__main__":
    # Small config consistent with the module: n_embd % n_head == 0.
    B, T = 2, 8
    n_embd, n_head = 32, 4

    key = jax.random.PRNGKey(0)
    kx, k1, k2, k3, k4 = jax.random.split(key, 5)

    # Deterministic parameter init (PyTorch nn.Linear-style uniform bounds).
    bound = 1.0 / math.sqrt(n_embd)
    params = {
        "attn_w": jax.random.uniform(
            k1, (n_embd, 3 * n_embd), jnp.float32, -bound, bound
        ),
        "attn_b": jax.random.uniform(k2, (3 * n_embd,), jnp.float32, -bound, bound),
        "proj_w": jax.random.uniform(k3, (n_embd, n_embd), jnp.float32, -bound, bound),
        "proj_b": jax.random.uniform(k4, (n_embd,), jnp.float32, -bound, bound),
    }

    x = jax.random.normal(kx, (B, T, n_embd), jnp.float32)

    ref = reference_forward(x, params, n_head)

    # f32 MXU path (tight numerics; exact softmax reciprocal).
    out_f32 = attention_head_forward(x, params, n_head, matmul_dtype=jnp.float32)
    out_f32 = jax.block_until_ready(out_f32)
    assert out_f32.shape == (B, T, n_embd)
    assert jnp.allclose(out_f32, ref, atol=2e-3, rtol=2e-3), "f32 path mismatch vs reference"

    # Default bf16-ingest path (recommended on v5e/v6e/v7x); softmax + accumulation stay f32.
    out_bf16 = attention_head_forward(x, params, n_head)
    out_bf16 = jax.block_until_ready(out_bf16)
    assert out_bf16.shape == (B, T, n_embd)
    assert jnp.allclose(out_bf16, ref, atol=5e-2, rtol=5e-2), "bf16 path mismatch vs reference"

    print("KERNEL_OK")
</pallas_src>

<mosaic_0001>
module attributes {stable_mosaic.version = 11 : i64} {
  func.func @_linear_kernel(%arg0: i32, %arg1: i32, %arg2: i32, %arg3: memref<16x128xf32, #tpu.memory_space<vmem>>, %arg4: memref<128x128xf32, #tpu.memory_space<vmem>>, %arg5: memref<1x128xf32, #tpu.memory_space<vmem>>, %arg6: memref<16x128xf32, #tpu.memory_space<vmem>>, %arg7: memref<16x128xf32, #tpu.memory_space<vmem>>) attributes {dimension_semantics = [#tpu.dimension_semantics<parallel>, #tpu.dimension_semantics<parallel>, #tpu.dimension_semantics<arbitrary>], iteration_bounds = array<i64: 1, 1, 1>, scalar_prefetch = 0 : i64, scratch_operands = 1 : i64, tpu.core_type = #tpu.core_type<tc>, window_params = [{transform_indices = @transform_0, window_bounds = array<i64: 16, 128>}, {transform_indices = @transform_1, window_bounds = array<i64: 128, 128>}, {transform_indices = @transform_2, window_bounds = array<i64: 1, 128>}, {transform_indices = @transform_3, window_bounds = array<i64: 16, 128>}]} {
    %c0_i32 = arith.constant 0 : i32
    %0 = arith.cmpi eq, %arg2, %c0_i32 : i32
    %1 = arith.extui %0 : i1 to i32
    %c0_i32_0 = arith.constant 0 : i32
    %2 = arith.cmpi ne, %1, %c0_i32_0 : i32
    scf.if %2 {
      %cst_10 = arith.constant 0.000000e+00 : f32
      %12 = vector.broadcast %cst_10 : f32 to vector<16x128xf32>
      %c0_11 = arith.constant 0 : index
      %c0_12 = arith.constant 0 : index
      %13 = vector.load %arg7[%c0_11, %c0_12] : memref<16x128xf32, #tpu.memory_space<vmem>>, vector<16x128xf32>
      tpu.vector_store %arg7[%c0_11, %c0_12], %12 {strides = array<i32>} : memref<16x128xf32, #tpu.memory_space<vmem>>, vector<16x128xf32>,
    } else {
    }
    %c0 = arith.constant 0 : index
    %c0_1 = arith.constant 0 : index
    %3 = vector.load %arg7[%c0, %c0_1] : memref<16x128xf32, #tpu.memory_space<vmem>>, vector<16x128xf32>
    %c0_2 = arith.constant 0 : index
    %c0_3 = arith.constant 0 : index
    %4 = vector.load %arg3[%c0_2, %c0_3] : memref<16x128xf32, #tpu.memory_space<vmem>>, vector<16x128xf32>
    %c0_4 = arith.constant 0 : index
    %c0_5 = arith.constant 0 : index
    %5 = vector.load %arg4[%c0_4, %c0_5] : memref<128x128xf32, #tpu.memory_space<vmem>>, vector<128x128xf32>
    %cst = arith.constant dense<0.000000e+00> : vector<16x128xf32>
    %6 = tpu.matmul %4, %5, %cst {dimension_numbers = #tpu.dot_dimension_numbers<[1], [0], [0], [1], [0, 0, 1, 1], [], []>} : vector<16x128xf32>, vector<128x128xf32>, vector<16x128xf32> -> vector<16x128xf32>
    %7 = arith.addf %3, %6 : vector<16x128xf32>
    %c0_6 = arith.constant 0 : index
    %c0_7 = arith.constant 0 : index
    %8 = vector.load %arg7[%c0_6, %c0_7] : memref<16x128xf32, #tpu.memory_space<vmem>>, vector<16x128xf32>
    tpu.vector_store %arg7[%c0_6, %c0_7], %7 {strides = array<i32>} : memref<16x128xf32, #tpu.memory_space<vmem>>, vector<16x128xf32>,
    %c0_i32_8 = arith.constant 0 : i32
    %9 = arith.cmpi eq, %arg2, %c0_i32_8 : i32
    %10 = arith.extui %9 : i1 to i32
    %c0_i32_9 = arith.constant 0 : i32
    %11 = arith.cmpi ne, %10, %c0_i32_9 : i32
    scf.if %11 {
      %c0_10 = arith.constant 0 : index
      %c0_11 = arith.constant 0 : index
      %12 = vector.load %arg7[%c0_10, %c0_11] : memref<16x128xf32, #tpu.memory_space<vmem>>, vector<16x128xf32>
      %c0_12 = arith.constant 0 : index
      %c0_13 = arith.constant 0 : index
      %13 = vector.load %arg5[%c0_12, %c0_13] : memref<1x128xf32, #tpu.memory_space<vmem>>, vector<1x128xf32>
      %14 = vector.broadcast %13 : vector<1x128xf32> to vector<16x128xf32>
      %15 = arith.addf %12, %14 : vector<16x128xf32>
      %c0_14 = arith.constant 0 : index
      %c0_15 = arith.constant 0 : index
      %16 = vector.load %arg6[%c0_14, %c0_15] : memref<16x128xf32, #tpu.memory_space<vmem>>, vector<16x128xf32>
      tpu.vector_store %arg6[%c0_14, %c0_15], %15 {strides = array<i32>} : memref<16x128xf32, #tpu.memory_space<vmem>>, vector<16x128xf32>,
    } else {
    }
    return
  }
  func.func @transform_0(%arg0: i32, %arg1: i32, %arg2: i32) -> (i32, i32) {
    %c0_i32 = arith.constant 0 : i32
    return %arg0, %arg2 : i32, i32
  }
  func.func @transform_1(%arg0: i32, %arg1: i32, %arg2: i32) -> (i32, i32) {
    %c0_i32 = arith.constant 0 : i32
    return %arg2, %arg1 : i32, i32
  }
  func.func @transform_2(%arg0: i32, %arg1: i32, %arg2: i32) -> (i32, i32) {
    %c0_i32 = arith.constant 0 : i32
    %c0_i32_0 = arith.constant 0 : i32
    return %c0_i32, %arg1 : i32, i32
  }
  func.func @transform_3(%arg0: i32, %arg1: i32, %arg2: i32) -> (i32, i32) {
    %c0_i32 = arith.constant 0 : i32
    return %arg0, %arg1 : i32, i32
  }
}

</mosaic_0001>

<bundles_post_ra>
// kernel: tpu_custom_call.1
= control target key start
LH: loop header
LB: loop body
LE: loop exit
PB: predicated region body
PF: predicated region fallthrough
CT: control target
= control target key end

     0   :  { %8 = vsyncpa [#allocation4], 0  ;;  %s418_s0 = inlined_call_operand.hbm [shape: f32[16,128], index: 0, kind: input, shape index: {}]   ;;  %s419_s1 = inlined_call_operand.hbm [shape: f32[128,128], index: 1, kind: input, shape index: {}]   ;;  %s420_s2 = inlined_call_operand.vmem [shape: f32[1,128], index: 2, kind: input, shape index: {}]   ;;  %s421_s3 = inlined_call_operand.hbm [shape: f32[16,128], index: 3, kind: output, shape index: {}]  }
   0x1   :  { %9 = vsyncpa [#allocation7], 0 }
   0x2   :  { %10 = vsyncpa [#allocation5], 0  ;;  %s345_s12 = smov [#allocation3]   ;;  %s273_s16 = scalar_lea.hbm %s418_s0, 256 }
   0x3   :  { %s16_s13 = sshll.u32 %s345_s12, 4  ;;  %p274_p0 = scmp.ne.s32.totalorder %s418_s0, %s273_s16  ;;  %s17_s13 = int_to_ptr.vmem [resolvable:$true] %s16_s13 }
   0x4   :  { %p277_p1 = scmp.lt.u32.totalorder %s273_s16, %s418_s0 }
   0x6   :  { %p279_p2 = pnand %p277_p1, %p274_p0 }
   0x8   :  { %282 = shalt.err (!%p279_p2)
}
   0x9   :  { %s283_s21 = scalar_lea.vmem %s17_s13, 256  ;;  %p288_p4 = scmp.lt.s32.totalorder %s17_s13, %s17_s13 }
   0xa   :  { %p284_p3 = scmp.ne.s32.totalorder %s17_s13, %s283_s21  ;;  %p289_p5 = scmp.lt.s32.totalorder %s283_s21, %s283_s21 }
   0xc   :  { %p290_p6 = por %p289_p5, %p288_p4 }
   0xe   :  { %p291_p7 = pnand %p290_p6, %p284_p3 }
  0x10   :  { %294 = shalt.err (!%p291_p7)
}
  0x11   :  { %s346_s22 = smov 128   ;;  %s347_s23 = smov 8  }
  0x12   :  { %22 = dma.hbm_to_vmem [thread:$0]  %s418_s0, 256, %s17_s13, [#allocation4], %s346_s22, %s346_s22, %s347_s23  }
  0x13   :  { %s348_s26 = smov [#allocation6]   ;;  %s295_s30 = scalar_lea.hbm %s419_s1, 2048 }
  0x14   :  { %s28_s27 = sshll.u32 %s348_s26, 4  ;;  %p296_p8 = scmp.ne.s32.totalorder %s419_s1, %s295_s30  ;;  %s29_s27 = int_to_ptr.vmem [resolvable:$true] %s28_s27 }
  0x15   :  { %p299_p9 = scmp.lt.u32.totalorder %s295_s30, %s419_s1 }
  0x17   :  { %p301_p10 = pnand %p299_p9, %p296_p8 }
  0x19   :  { %304 = shalt.err (!%p301_p10)
}
  0x1a   :  { %s305_s8 = scalar_lea.vmem %s29_s27, 2048  ;;  %p310_p12 = scmp.lt.s32.totalorder %s29_s27, %s29_s27 }
  0x1b   :  { %p306_p11 = scmp.ne.s32.totalorder %s29_s27, %s305_s8  ;;  %p311_p13 = scmp.lt.s32.totalorder %s305_s8, %s305_s8 }
  0x1d   :  { %p312_p0 = por %p311_p13, %p310_p12 }
  0x1f   :  { %p313_p1 = pnand %p312_p0, %p306_p11 }
  0x21   :  { %316 = shalt.err (!%p313_p1)
}
  0x22   :  { %34 = dma.hbm_to_vmem [thread:$0]  %s419_s1, 2048, %s29_s27, [#allocation7], %s346_s22, %s346_s22, %s347_s23  }
  0x23   :  { %339 = dma.done.wait [#allocation4], 256  }
  0x24   :  { %340 = vsyncadd [#allocation4], 4294967040 }
  0x25   :  { %341 = dma.done.wait [#allocation7], 2048  }
  0x26   :  { %342 = vsyncadd [#allocation7], 4294965248  ;;  %v53_v0 = vld [vmem:[#allocation6] sm:$0xff]  ;;  %v54_v1 = vld [vmem:[#allocation6 + $0x8] sm:$0xff]  ;;  %s349_s11 = smov [#allocation8]  }
  0x27   :  { %v55_v2 = vld [vmem:[#allocation6 + $0x10] sm:$0xff]  ;;  %v236_v3 = vpack.c.bf16 %v54_v1, %v53_v0  ;;  %v56_v4 = vld [vmem:[#allocation6 + $0x18] sm:$0xff]  ;;  %v57_v6 = vld [vmem:[#allocation6 + $0x20] sm:$0xff]  ;;  %s169_s12 = sshll.u32 %s349_s11, 4  ;;  %s170_s12 = int_to_ptr.vmem [resolvable:$true] %s169_s12 }
  0x28   :  { %v240_v5 = vpack.c.bf16 %v56_v4, %v55_v2  ;;  %v58_v7 = vld [vmem:[#allocation6 + $0x28] sm:$0xff]  ;;  %v51_v9 = vld [vmem:[#allocation3] sm:$0xff]  ;;  %v60_v11 = vld [vmem:[#allocation6 + $0x38] sm:$0xff]  ;;  %s317_s13 = scalar_lea.vmem %s170_s12, 256  ;;  %p322_p3 = scmp.lt.s32.totalorder %s170_s12, %s170_s12 }
  0x29   :  { %237 = vmatprep.subr.bf16.mxu0 %v236_v3  ;;  %v244_v8 = vpack.c.bf16 %v58_v7, %v57_v6  ;;  %v59_v10 = vld [vmem:[#allocation6 + $0x30] sm:$0xff]  ;;  %233 = vmatprep.mubr.f32.mxu0 %v51_v9  ;;  %v61_v13 = vld [vmem:[#allocation6 + $0x40] sm:$0xff]  ;;  %v62_v14 = vld [vmem:[#allocation6 + $0x48] sm:$0xff]  ;;  %p318_p2 = scmp.ne.s32.totalorder %s170_s12, %s317_s13  ;;  %p323_p4 = scmp.lt.s32.totalorder %s317_s13, %s317_s13 }
  0x2a   :  { %239 = vmatpush3.bf16.msra.mxu0 %v236_v3  ;;  %v248_v12 = vpack.c.bf16 %v60_v11, %v59_v10  ;;  %v252_v15 = vpack.c.bf16 %v62_v14, %v61_v13  ;;  %v63_v16 = vld [vmem:[#allocation6 + $0x50] sm:$0xff]  ;;  %v64_v17 = vld [vmem:[#allocation6 + $0x58] sm:$0xff]  ;;  %v65_v19 = vld [vmem:[#allocation6 + $0x60] sm:$0xff] }
  0x2b   :  { %241 = vmatprep.subr.bf16.mxu0 %v240_v5  ;;  %v256_v18 = vpack.c.bf16 %v64_v17, %v63_v16  ;;  %v66_v20 = vld [vmem:[#allocation6 + $0x68] sm:$0xff]  ;;  %v67_v22 = vld [vmem:[#allocation6 + $0x70] sm:$0xff]  ;;  %v68_v23 = vld [vmem:[#allocation6 + $0x78] sm:$0xff]  ;;  %p324_p5 = por %p323_p4, %p322_p3 }
  0x2c   :  { %v260_v21 = vpack.c.bf16 %v66_v20, %v65_v19  ;;  %v264_v24 = vpack.c.bf16 %v68_v23, %v67_v22  ;;  %v52_v25 = vld [vmem:[#allocation3 + $0x8] sm:$0xff]  ;;  %v182_v26 = vld [vmem:[%s420_s2] ss:$0 sm:$0xff] }
  0x2d   :  { %p325_p6 = pnand %p324_p5, %p318_p2 }
  0x2e   :  { %243 = vmatpush3.bf16.msra.mxu0 %v240_v5 }
  0x2f   :  { %245 = vmatprep.subr.bf16.mxu0 %v244_v8 }
  0x32   :  { %247 = vmatpush3.bf16.msra.mxu0 %v244_v8 }
  0x33   :  { %249 = vmatprep.subr.bf16.mxu0 %v248_v12 }
  0x36   :  { %251 = vmatpush3.bf16.msra.mxu0 %v248_v12 }
  0x37   :  { %253 = vmatprep.subr.bf16.mxu0 %v252_v15 }
  0x3a   :  { %255 = vmatpush3.bf16.msra.mxu0 %v252_v15 }
  0x3b   :  { %257 = vmatprep.subr.bf16.mxu0 %v256_v18 }
  0x3e   :  { %259 = vmatpush3.bf16.msra.mxu0 %v256_v18 }
  0x3f   :  { %261 = vmatprep.subr.bf16.mxu0 %v260_v21 }
  0x42   :  { %263 = vmatpush3.bf16.msra.mxu0 %v260_v21 }
  0x43   :  { %265 = vmatprep.subr.bf16.mxu0 %v264_v24 }
  0x46   :  { %267 = vmatpush3.bf16.msra.mxu0 %v264_v24 }
  0x49   :  { %234 = vmatmul.mubr.f32.vlgmr.msra.gmra.mrb[0].mxu0 %v52_v25 }
 0x11c   :  { %v235_v27 = vpop.f32.mrb[0].mxu0 }
 0x11d   :  { %v161_v28 = vadd.f32 %v235_v27, %v182_v26  ;;  %v135_v29 = vpop.f32.mrb[1].mxu0 }
 0x11e   :  { %v160_v30 = vadd.f32 %v182_v26, %v135_v29 }
 0x11f   :  { %163 = vst [vmem:[#allocation8 + $0x8] sm:$0xff] %v161_v28 }
 0x120   :  { %162 = vst [vmem:[#allocation8] sm:$0xff] %v160_v30 }
 0x121   :  { %328 = shalt.err (!%p325_p6)
}
 0x122   :  { %s329_s2 = scalar_lea.hbm %s421_s3, 256 }
 0x123   :  { %p330_p7 = scmp.ne.s32.totalorder %s421_s3, %s329_s2  ;;  %p333_p8 = scmp.lt.u32.totalorder %s329_s2, %s421_s3 }
 0x125   :  { %p335_p9 = pnand %p333_p8, %p330_p7 }
 0x127   :  { %338 = shalt.err (!%p335_p9)
}
 0x128   :  { %175 = dma.vmem_to_hbm [thread:$0]  %s170_s12, 256, %s421_s3, [#allocation5], %s346_s22, %s346_s22, %s347_s23  }
 0x129   :  { %343 = dma.done.wait [#allocation5], 256  }
 0x12a   :  { %344 = vsyncadd [#allocation5], 4294967040 }
 0x12b   :  { %179 = vsyncpa [#allocation4], 1 }
 0x12c   :  { %180 = vsyncpa [#allocation7], 1 }
 0x12d   :  { %181 = vsyncpa [#allocation5], 1 }

</bundles_post_ra>
